<compile_context>
chip_gen: v6e
topology: v6e:2x2x1
jax: 0.10.0
libtpu: 0.0.40
codegen_flags: <defaults>
</compile_context>

<pallas_src>
import functools

import jax
import jax.numpy as jnp
from jax.experimental import pallas as pl
from jax.experimental.pallas import tpu as pltpu


def _round_up(x, m):
    return (x + m - 1) // m * m


def _largest_divisor(n, cap, align):
    """Largest d with d % align == 0, d <= cap and n % d == 0 (None if none)."""
    cap = min(cap, n)
    cap -= cap % align
    for d in range(cap, 0, -align):
        if n % d == 0:
            return d
    return None


def _patch_embed_kernel(p_ref, w_ref, b_ref, o_ref):
    # p_ref: (tm, K)  compute-dtype patches tile (streamed over the M grid axis)
    # w_ref: (K, tn)  compute-dtype projection weight (resident; constant index)
    # b_ref: (1, tn)  f32 bias (resident)
    # o_ref: (tm, tn) output tile
    acc = jnp.dot(p_ref[...], w_ref[...], preferred_element_type=jnp.float32)
    o_ref[...] = (acc + b_ref[...]).astype(o_ref.dtype)


def patch_embed(x, weight, bias, *, kernel_size=(8, 8), stride=(8, 8),
                tm_max=1024, compute_dtype=jnp.bfloat16, out_dtype=None):
    """PatchEmbed forward: Conv2d(kernel==stride, pad 0) + NCHW->NHWC permute.

    x: (B, C, H, W). weight: (E, C, ph, pw). bias: (E,).
    Returns (B, Hp, Wp, E), matching PyTorch's proj(x).permute(0, 2, 3, 1).
    """
    assert tuple(kernel_size) == tuple(stride), "patchify path requires k == s"
    B, C, H, W = x.shape
    E = weight.shape[0]
    ph, pw = kernel_size
    assert H % ph == 0 and W % pw == 0
    Hp, Wp = H // ph, W // pw
    M = B * Hp * Wp                      # output rows (#patches)
    K = C * ph * pw                      # contraction dim (unpadded in HBM)
    out_dtype = x.dtype if out_dtype is None else out_dtype

    cbytes = jnp.dtype(compute_dtype).itemsize
    obytes = jnp.dtype(out_dtype).itemsize

    # --- N (embed) handling: avoid padding when possible; keep weight resident.
    if E % 128 == 0 or E <= 128:
        En = E                            # exact output shape, no post-slice
    else:
        En = _round_up(E, 128)            # lane-dense stores; slice afterwards
    max_w_bytes = 12 * 1024 * 1024
    if K * En * cbytes > max_w_bytes and En % 128 == 0:
        cap = max(128, (max_w_bytes // (K * cbytes)) // 128 * 128)
        tn = _largest_divisor(En, cap, 128) or 128
    else:
        tn = En                           # weight fully resident over the M axis

    # --- M tiling: prefer a tile that divides M exactly (no pad, no out slice).
    row_bytes = K * cbytes + En * obytes
    budget = 18 * 1024 * 1024             # streamed-tile budget (double buffered)
    tm_target = min(tm_max, max(64, (budget // (2 * row_bytes)) // 8 * 8))
    if M % 8 == 0:
        tm = _largest_divisor(M, tm_target, 8)
        if tm == M and M >= 16:
            # guarantee >= 2 blocks so both v7x TensorCores get work
            tm = _largest_divisor(M, M // 2, 8) or tm
        Mp = M
        if tm < 64 and M > 4096:          # pathological divisors: pad instead
            tm = tm_target
            Mp = _round_up(M, tm)
    else:
        if M <= 1024:
            tm, Mp = M, M                 # single full block (block == full dim)
        else:
            tm = tm_target
            Mp = _round_up(M, tm)

    # --- wrapper-side glue: patchify + bf16 cast (single unpadded (M, K) copy).
    # K ordering is (C, ph, pw), matching the conv-weight flattening below.
    patches = x.reshape(B, C, Hp, ph, Wp, pw).transpose(0, 2, 4, 1, 3, 5)
    patches = patches.reshape(M, K).astype(compute_dtype)
    if Mp != M:
        patches = jnp.pad(patches, ((0, Mp - M), (0, 0)))

    w2d = weight.reshape(E, K).T.astype(compute_dtype)         # (K, E)
    b2d = bias.astype(jnp.float32).reshape(1, E)
    if En != E:
        w2d = jnp.pad(w2d, ((0, 0), (0, En - E)))
        b2d = jnp.pad(b2d, ((0, 0), (0, En - E)))

    grid = (Mp // tm, En // tn)

    # VMEM working set (double-buffered) -> explicit, generation-safe limit.
    need = (2 * tm * K * cbytes + 2 * K * tn * cbytes
            + 2 * tn * 4 + 2 * tm * tn * obytes)
    vmem_limit = int(min(64 * 1024 * 1024, max(32 * 1024 * 1024, 2 * need)))

    out = pl.pallas_call(
        _patch_embed_kernel,
        out_shape=jax.ShapeDtypeStruct((Mp, En), out_dtype),
        grid_spec=pltpu.PrefetchScalarGridSpec(
            num_scalar_prefetch=0,
            grid=grid,
            in_specs=[
                pl.BlockSpec((tm, K), lambda i, j: (i, 0)),    # patches (streamed)
                pl.BlockSpec((K, tn), lambda i, j: (0, j)),    # weight (resident)
                pl.BlockSpec((1, tn), lambda i, j: (0, j)),    # bias   (resident)
            ],
            out_specs=pl.BlockSpec((tm, tn), lambda i, j: (i, j)),
        ),
        compiler_params=pltpu.CompilerParams(
            dimension_semantics=("parallel", "parallel"),      # megacore on v7x
            vmem_limit_bytes=vmem_limit,
        ),
    )(patches, w2d, b2d)

    if Mp != M or En != E:
        out = out[:M, :E]                 # only taken on padded (rare) paths
    return out.reshape(B, Hp, Wp, E)      # free metadata reshape when unpadded


def _reference(x, weight, bias, ksize):
    ref = jax.lax.conv_general_dilated(
        x, weight, window_strides=ksize, padding="VALID",
        dimension_numbers=("NCHW", "OIHW", "NCHW"))
    return jnp.transpose(ref, (0, 2, 3, 1)) + bias.reshape(1, 1, 1, -1)


if __name__ == "__main__":
    key = jax.random.PRNGKey(0)

    # Case 1: small shapes consistent with the module: B=2, C=3, H=W=16,
    # patch 8x8, embed_dim=32 (single-block path, E < 128).
    # Case 2: slightly larger (H=W=32, E=128) to exercise multi-block M tiling
    # and lane-dense output stores.
    cases = [
        dict(B=2, C=3, H=16, W=16, E=32, ksize=(8, 8)),
        dict(B=2, C=3, H=32, W=32, E=128, ksize=(8, 8)),
    ]

    for cfg in cases:
        B, C, H, W, E, ksize = (cfg["B"], cfg["C"], cfg["H"], cfg["W"],
                                cfg["E"], cfg["ksize"])
        key, kx, kw, kb = jax.random.split(key, 4)
        x = jax.random.normal(kx, (B, C, H, W), dtype=jnp.float32)
        fan_in = C * ksize[0] * ksize[1]
        bound = 1.0 / (fan_in ** 0.5)
        weight = jax.random.uniform(kw, (E, C, ksize[0], ksize[1]),
                                    minval=-bound, maxval=bound,
                                    dtype=jnp.float32)
        bias = jax.random.uniform(kb, (E,), minval=-bound, maxval=bound,
                                  dtype=jnp.float32)

        pe = jax.jit(functools.partial(patch_embed, kernel_size=ksize,
                                       stride=ksize))
        out = jax.block_until_ready(pe(x, weight, bias))

        ref = _reference(x, weight, bias, ksize)
        Hp, Wp = H // ksize[0], W // ksize[1]
        assert out.shape == (B, Hp, Wp, E)
        assert out.dtype == x.dtype
        # bf16 operands (f32 accumulation) -> ~1e-2-level deviation vs f32 conv.
        assert jnp.allclose(out, ref, atol=3e-2, rtol=3e-2)

    print("KERNEL_OK")
</pallas_src>

<mosaic_0001>
module attributes {stable_mosaic.version = 11 : i64} {
  func.func @_patch_embed_kernel(%arg0: i32, %arg1: i32, %arg2: memref<8x192xbf16, #tpu.memory_space<vmem>>, %arg3: memref<192x32xbf16, #tpu.memory_space<vmem>>, %arg4: memref<1x32xf32, #tpu.memory_space<vmem>>, %arg5: memref<8x32xf32, #tpu.memory_space<vmem>>) attributes {dimension_semantics = [#tpu.dimension_semantics<parallel>, #tpu.dimension_semantics<parallel>], iteration_bounds = array<i64: 1, 1>, scalar_prefetch = 0 : i64, scratch_operands = 0 : i64, tpu.core_type = #tpu.core_type<tc>, window_params = [{transform_indices = @transform_0, window_bounds = array<i64: 8, 192>}, {transform_indices = @transform_1, window_bounds = array<i64: 192, 32>}, {transform_indices = @transform_2, window_bounds = array<i64: 1, 32>}, {transform_indices = @transform_3, window_bounds = array<i64: 8, 32>}]} {
    %c0 = arith.constant 0 : index
    %c0_0 = arith.constant 0 : index
    %0 = vector.load %arg2[%c0, %c0_0] : memref<8x192xbf16, #tpu.memory_space<vmem>>, vector<8x192xbf16>
    %c0_1 = arith.constant 0 : index
    %c0_2 = arith.constant 0 : index
    %1 = vector.load %arg3[%c0_1, %c0_2] : memref<192x32xbf16, #tpu.memory_space<vmem>>, vector<192x32xbf16>
    %cst = arith.constant dense<0.000000e+00> : vector<8x32xf32>
    %2 = tpu.matmul %0, %1, %cst {dimension_numbers = #tpu.dot_dimension_numbers<[1], [0], [0], [1], [0, 0, 1, 1], [], []>} : vector<8x192xbf16>, vector<192x32xbf16>, vector<8x32xf32> -> vector<8x32xf32>
    %c0_3 = arith.constant 0 : index
    %c0_4 = arith.constant 0 : index
    %3 = vector.load %arg4[%c0_3, %c0_4] : memref<1x32xf32, #tpu.memory_space<vmem>>, vector<1x32xf32>
    %4 = vector.broadcast %3 : vector<1x32xf32> to vector<8x32xf32>
    %5 = arith.addf %2, %4 : vector<8x32xf32>
    %c0_5 = arith.constant 0 : index
    %c0_6 = arith.constant 0 : index
    %6 = vector.load %arg5[%c0_5, %c0_6] : memref<8x32xf32, #tpu.memory_space<vmem>>, vector<8x32xf32>
    tpu.vector_store %arg5[%c0_5, %c0_6], %5 {strides = array<i32>} : memref<8x32xf32, #tpu.memory_space<vmem>>, vector<8x32xf32>,
    return
  }
  func.func @transform_0(%arg0: i32, %arg1: i32) -> (i32, i32) {
    %c0_i32 = arith.constant 0 : i32
    %c0_i32_0 = arith.constant 0 : i32
    return %arg0, %c0_i32 : i32, i32
  }
  func.func @transform_1(%arg0: i32, %arg1: i32) -> (i32, i32) {
    %c0_i32 = arith.constant 0 : i32
    %c0_i32_0 = arith.constant 0 : i32
    return %c0_i32, %arg1 : i32, i32
  }
  func.func @transform_2(%arg0: i32, %arg1: i32) -> (i32, i32) {
    %c0_i32 = arith.constant 0 : i32
    %c0_i32_0 = arith.constant 0 : i32
    return %c0_i32, %arg1 : i32, i32
  }
  func.func @transform_3(%arg0: i32, %arg1: i32) -> (i32, i32) {
    %c0_i32 = arith.constant 0 : i32
    return %arg0, %arg1 : i32, i32
  }
}

</mosaic_0001>

<bundles_post_ra>
// kernel: patch_embed.1
= control target key start
LH: loop header
LB: loop body
LE: loop exit
PB: predicated region body
PF: predicated region fallthrough
CT: control target
= control target key end

     0   :  { %v240_v1 = vmov 0   ;;  %vm126_vm0 = vcmask 523264   ;;  %s307_s0 = inlined_call_operand.vmem [shape: bf16[8,192], index: 0, kind: input, shape index: {}]   ;;  %s308_s1 = inlined_call_operand.vmem [shape: bf16[192,32], index: 1, kind: input, shape index: {}]   ;;  %s309_s2 = inlined_call_operand.vmem [shape: f32[1,32], index: 2, kind: input, shape index: {}]   ;;  %s310_s3 = inlined_call_operand.hbm [shape: f32[8,32], index: 3, kind: output, shape index: {}]  }
   0x1   :  { %v204_v0 = vld [vmem:[%s308_s1 + $0x38] sm:$0xff]   ;;  %130 = vmatprep.subr.bf16.mxu0 %v240_v1  ;;  %v205_v2 = vld [vmem:[%s308_s1 + $0x30] sm:$0xff]   ;;  %v206_v3 = vld [vmem:[%s308_s1 + $0x28] sm:$0xff]  }
   0x2   :  { %131 = vmatpush1.bf16.msra.mxu0 %v204_v0  ;;  %v207_v4 = vld [vmem:[%s308_s1 + $0x20] sm:$0xff]  }
   0x3   :  { %132 = vmatprep.subr.bf16.mxu0 %v240_v1  ;;  %v16_v5 = vld [vmem:[%s307_s0] sm:$0xff] }
   0x6   :  { %133 = vmatpush1.bf16.msra.mxu0 %v205_v2 }
   0x7   :  { %134 = vmatprep.subr.bf16.mxu0 %v240_v1 }
   0xa   :  { %135 = vmatpush1.bf16.msra.mxu0 %v206_v3 }
   0xb   :  { %136 = vmatprep.subr.bf16.mxu0 %v240_v1 }
   0xc   :  { %8 = vsyncpa [#allocation3], 0  ;;  %v188_v6 = vcombine.high %v16_v5, %v16_v5  ;;  %v208_v7 = vld [vmem:[%s308_s1 + $0x18] sm:$0xff]   ;;  %v209_v8 = vld [vmem:[%s308_s1 + $0x10] sm:$0xff]   ;;  %v187_v15 = vcombine.low %v16_v5, %v16_v5  ;;  %s241_s12 = smov [#allocation2]   ;;  %vm170_vm1 = vcmask 261120  }
   0xd   :  { %v210_v9 = vld [vmem:[%s308_s1 + $0x8] sm:$0xff]   ;;  %v211_v10 = vld [vmem:[%s308_s1] sm:$0xff]   ;;  %v212_v11 = vld [vmem:[%s308_s1 + $0x58] sm:$0xff]   ;;  %s178_s13 = sshll.u32 %s241_s12, 4  ;;  %s179_s13 = int_to_ptr.vmem [resolvable:$true] %s178_s13 }
   0xe   :  { %137 = vmatpush1.bf16.msra.mxu0 %v207_v4  ;;  %201 = vmatprep.mubr.msk.bf16.mxu0 %vm126_vm0, %v188_v6  ;;  %v213_v12 = vld [vmem:[%s308_s1 + $0x50] sm:$0xff]   ;;  %v214_v13 = vld [vmem:[%s308_s1 + $0x48] sm:$0xff]   ;;  %v215_v14 = vld [vmem:[%s308_s1 + $0x40] sm:$0xff]   ;;  %s218_s14 = scalar_lea.vmem %s179_s13, 128  ;;  %p223_p1 = scmp.lt.s32.totalorder %s179_s13, %s179_s13 }
   0xf   :  { %138 = vmatprep.subr.bf16.mxu0 %v240_v1  ;;  %v186_v16 = vld [vmem:[%s309_s2] ss:$0 sm:$0xff]  ;;  %p219_p0 = scmp.ne.s32.totalorder %s179_s13, %s218_s14  ;;  %p224_p2 = scmp.lt.s32.totalorder %s218_s14, %s218_s14 }
  0x11   :  { %p225_p3 = por %p224_p2, %p223_p1 }
  0x12   :  { %139 = vmatpush1.bf16.msra.mxu0 %v208_v7 }
  0x13   :  { %140 = vmatprep.subr.bf16.mxu0 %v240_v1  ;;  %p226_p4 = pnand %p225_p3, %p219_p0 }
  0x16   :  { %141 = vmatpush1.bf16.msra.mxu0 %v209_v8 }
  0x17   :  { %142 = vmatprep.subr.bf16.mxu0 %v240_v1 }
  0x1a   :  { %143 = vmatpush1.bf16.msra.mxu0 %v210_v9 }
  0x1b   :  { %144 = vmatprep.subr.bf16.mxu0 %v240_v1 }
  0x1e   :  { %145 = vmatpush1.bf16.msra.mxu0 %v211_v10 }
  0x1f   :  { %154 = vmatprep.subr.bf16.mxu0 %v240_v1 }
  0x22   :  { %155 = vmatpush2.bf16.msra.mxu0 %v212_v11 }
  0x23   :  { %156 = vmatprep.subr.bf16.mxu0 %v240_v1 }
  0x26   :  { %157 = vmatpush2.bf16.msra.mxu0 %v213_v12 }
  0x27   :  { %158 = vmatprep.subr.bf16.mxu0 %v240_v1 }
  0x2a   :  { %159 = vmatpush2.bf16.msra.mxu0 %v214_v13 }
  0x2b   :  { %160 = vmatprep.subr.bf16.mxu0 %v240_v1 }
  0x2e   :  { %161 = vmatpush2.bf16.msra.mxu0 %v215_v14 }
  0x31   :  { %163 = vmatmul.mubr.bf16.vlgmr.msra.gmra.mxu0 %v187_v15 }
  0xf1   :  { %v164_v17 = vpop.f32.mrf.mxu0 }
  0xf2   :  { %v165_v18 = vadd.f32 %v186_v16, %v164_v17 }
  0xf3   :  { %v166_v19 = vpop.f32.mrf.mxu0 }
  0xf4   :  { %171 = vst.msk [vmem:[#allocation2] sm:$0xff] %vm170_vm1, %v165_v18 }
  0xf5   :  { %v167_v20 = vpop.f32.mrf.mxu0 }
  0xf6   :  { %229 = shalt.err (!%p226_p4)
}
  0xf7   :  { %181 = dma.vmem_to_hbm [thread:$0]  %s179_s13, 128, %s310_s3, [#allocation3]   ;;  %v168_v21 = vpop.f32.mrf.mxu0 }
  0xf8   :  { %238 = dma.done.wait [#allocation3], 128  }
  0xf9   :  { %239 = vsyncadd [#allocation3], 4294967168 }
  0xfa   :  { %185 = vsyncpa [#allocation3], 1 }

</bundles_post_ra>
